<compile_context>
chip_gen: v5e
topology: v5e:2x2
jax: 0.10.0
libtpu: 0.0.40
codegen_flags: <defaults>
</compile_context>

<pallas_src>
import jax
import jax.numpy as jnp
from jax import lax
from jax.experimental import pallas as pl
from jax.experimental.pallas import tpu as pltpu


def feedforward_kernel(x_ref, w1t_ref, b1_ref, w2_ref, b2_ref, o_ref):
    # fc1 in transposed layout: hT[h, b] = sum_k w1T[h, k] * x[b, k]
    # hidden on sublanes (Hp rows), batch on the 128-lane axis -> lane-dense.
    ht = lax.dot_general(
        w1t_ref[...], x_ref[...],
        dimension_numbers=(((1,), (1,)), ((), ())),       # contract d_in on both
        preferred_element_type=jnp.float32)                # (Hp, tb), MXU f32 acc
    ht = jax.nn.sigmoid(ht + b1_ref[...])                  # EUP: only Hp rows of work
    # fc2: per-lane multiply + short sublane reduce (XLU); result (1, tb).
    o = jnp.sum(ht * w2_ref[...], axis=0, keepdims=True)
    # fc2 bias from SMEM scalar + ReLU; lane-dense store.
    o_ref[...] = jnp.maximum(o + b2_ref[0, 0], 0.0)


def _round_up(n, m):
    return (n + m - 1) // m * m


def feedforward(x, w1, b1, w2, b2, *, tile_b=4096):
    """Forward of the PyTorch Feedforward module.

    x:  [B, D_in] (cast to f32, mirroring torch.tensor(x).float())
    w1: [D_in, H]  (fc1 weight pre-transposed to [in, out])
    b1: [1, H] or [H]   (fc1 bias)
    w2: [H, 1] or [H]   (fc2 weight pre-transposed)
    b2: [1, 1] or scalar (fc2 bias)
    returns [B, 1] float32
    """
    x = jnp.asarray(x, jnp.float32)
    w1 = jnp.asarray(w1, jnp.float32)
    b1 = jnp.asarray(b1, jnp.float32).reshape(-1)
    w2 = jnp.asarray(w2, jnp.float32).reshape(-1)
    b2 = jnp.asarray(b2, jnp.float32).reshape(1, 1)

    B, d_in = x.shape
    H = w1.shape[1]

    # Hidden dim padded only to a multiple of 8 sublanes (zero rows are inert:
    # sigmoid(0)=0.5 multiplies zero-padded w2 rows).  Weight reshapes are tiny,
    # one-off wrapper ops.
    Hp = _round_up(H, 8)
    w1t = jnp.pad(w1.T, ((0, Hp - H), (0, 0)))            # [Hp, d_in]
    b1c = jnp.pad(b1, (0, Hp - H)).reshape(Hp, 1)          # [Hp, 1]
    w2c = jnp.pad(w2, (0, Hp - H)).reshape(Hp, 1)          # [Hp, 1]

    # Batch tile selection.
    if B <= 128:
        # Single block equal to the full array dims (exempt from the (8,128)
        # divisibility rule); grid of 1.
        tb = B
    else:
        # Lane-dense output blocks need tb % 128 == 0 once grid > 1.
        tile_b = max(128, _round_up(tile_b, 128))
        # Keep >= 2 grid steps where possible so ("parallel",) can shard the
        # batch axis across both v7x TensorCores.
        tb = min(tile_b, _round_up(pl.cdiv(B, 2), 128))
        # Keep the double-buffered x tile well inside scoped VMEM (v7x: 64 MiB/TC).
        max_tb_vmem = max(128, (32 * 1024 * 1024) // (8 * d_in) // 128 * 128)
        tb = max(128, min(tb, max_tb_vmem))
    n_tiles = pl.cdiv(B, tb)

    # No HBM-wide pad of x: the last block may read past B (unspecified rows);
    # those only affect their own output lanes, which are sliced off below.
    out = pl.pallas_call(
        feedforward_kernel,
        out_shape=jax.ShapeDtypeStruct((1, n_tiles * tb), jnp.float32),
        grid=(n_tiles,),
        in_specs=[
            pl.BlockSpec((tb, d_in), lambda i: (i, 0)),    # x tile (pipelined per step)
            pl.BlockSpec((Hp, d_in), lambda i: (0, 0)),    # w1^T (VMEM-resident)
            pl.BlockSpec((Hp, 1), lambda i: (0, 0)),       # b1 column (VMEM-resident)
            pl.BlockSpec((Hp, 1), lambda i: (0, 0)),       # w2 column (VMEM-resident)
            pl.BlockSpec((1, 1), lambda i: (0, 0),
                         memory_space=pltpu.SMEM),         # b2 scalar in SMEM
        ],
        out_specs=pl.BlockSpec((1, tb), lambda i: (0, i)), # lane-dense output block
        compiler_params=pltpu.CompilerParams(
            dimension_semantics=("parallel",),             # megacore-shard the batch axis
            vmem_limit_bytes=48 * 1024 * 1024,             # safe on v5e/v6e/v7x
        ),
    )(x, w1t, b1c, w2c, b2)

    # Drop tail lanes from the (possibly partial) last block, back to [B, 1].
    return out[0, :B].reshape(B, 1)


def init_params(key, input_size, hidden_size):
    """Deterministic init mimicking torch.nn.Linear's U(-1/sqrt(fan_in), 1/sqrt(fan_in))."""
    k1, k2, k3, k4 = jax.random.split(key, 4)
    bound1 = 1.0 / jnp.sqrt(jnp.float32(input_size))
    bound2 = 1.0 / jnp.sqrt(jnp.float32(hidden_size))
    w1 = jax.random.uniform(k1, (input_size, hidden_size), jnp.float32,
                            minval=-bound1, maxval=bound1)
    b1 = jax.random.uniform(k2, (1, hidden_size), jnp.float32,
                            minval=-bound1, maxval=bound1)
    w2 = jax.random.uniform(k3, (hidden_size, 1), jnp.float32,
                            minval=-bound2, maxval=bound2)
    b2 = jax.random.uniform(k4, (1, 1), jnp.float32,
                            minval=-bound2, maxval=bound2)
    return w1, b1, w2, b2


if __name__ == "__main__":
    # Small, deterministic demo; tile_b=128 so the multi-tile grid, resident
    # weights, and the partial (out-of-bounds-tail) last block are all
    # exercised (200 rows -> 2 tiles of 128, 56 discarded tail lanes).
    batch = 200
    input_size = 32
    hidden_size = 20

    key = jax.random.PRNGKey(0)
    kx, kp = jax.random.split(key)
    x = jax.random.normal(kx, (batch, input_size), jnp.float32)
    w1, b1, w2, b2 = init_params(kp, input_size, hidden_size)

    out = feedforward(x, w1, b1, w2, b2, tile_b=128)
    out = jax.block_until_ready(out)

    # Pure-JAX reference check (PyTorch forward semantics).
    ref = jnp.maximum(jax.nn.sigmoid(x @ w1 + b1) @ w2 + b2, 0.0)
    assert out.shape == (batch, 1)
    assert jnp.allclose(out, ref, atol=1e-5, rtol=1e-5)

    print("KERNEL_OK")
</pallas_src>

<mosaic_0001>
module attributes {stable_mosaic.version = 11 : i64} {
  func.func @feedforward_kernel(%arg0: i32, %arg1: memref<128x32xf32, #tpu.memory_space<vmem>>, %arg2: memref<24x32xf32, #tpu.memory_space<vmem>>, %arg3: memref<24x1xf32, #tpu.memory_space<vmem>>, %arg4: memref<24x1xf32, #tpu.memory_space<vmem>>, %arg5: memref<1x1xf32, #tpu.memory_space<smem>>, %arg6: memref<1x128xf32, #tpu.memory_space<vmem>>) attributes {dimension_semantics = [#tpu.dimension_semantics<parallel>], iteration_bounds = array<i64: 2>, scalar_prefetch = 0 : i64, scratch_operands = 0 : i64, tpu.core_type = #tpu.core_type<tc>, window_params = [{transform_indices = @transform_0, window_bounds = array<i64: 128, 32>}, {pipeline_mode = #tpu.pipeline_mode<synchronous>, transform_indices = @transform_1, window_bounds = array<i64: 24, 32>}, {pipeline_mode = #tpu.pipeline_mode<synchronous>, transform_indices = @transform_2, window_bounds = array<i64: 24, 1>}, {pipeline_mode = #tpu.pipeline_mode<synchronous>, transform_indices = @transform_3, window_bounds = array<i64: 24, 1>}, {transform_indices = @transform_4, window_bounds = array<i64: 1, 1>}, {transform_indices = @transform_5, window_bounds = array<i64: 1, 128>}]} {
    %c0 = arith.constant 0 : index
    %c0_0 = arith.constant 0 : index
    %0 = vector.load %arg2[%c0, %c0_0] : memref<24x32xf32, #tpu.memory_space<vmem>>, vector<24x32xf32>
    %c0_1 = arith.constant 0 : index
    %c0_2 = arith.constant 0 : index
    %1 = vector.load %arg1[%c0_1, %c0_2] : memref<128x32xf32, #tpu.memory_space<vmem>>, vector<128x32xf32>
    %cst = arith.constant dense<0.000000e+00> : vector<24x128xf32>
    %2 = tpu.matmul %0, %1, %cst {dimension_numbers = #tpu.dot_dimension_numbers<[1], [1], [0], [0], [0, 0, 1, 0], [], []>} : vector<24x32xf32>, vector<128x32xf32>, vector<24x128xf32> -> vector<24x128xf32>
    %c0_3 = arith.constant 0 : index
    %c0_4 = arith.constant 0 : index
    %3 = vector.load %arg3[%c0_3, %c0_4] : memref<24x1xf32, #tpu.memory_space<vmem>>, vector<24x1xf32>
    %4 = vector.broadcast %3 : vector<24x1xf32> to vector<24x128xf32>
    %5 = arith.addf %2, %4 : vector<24x128xf32>
    %6 = arith.negf %5 : vector<24x128xf32>
    %7 = math.exp %6 : vector<24x128xf32>
    %cst_5 = arith.constant 1.000000e+00 : f32
    %8 = vector.broadcast %cst_5 : f32 to vector<24x128xf32>
    %9 = arith.addf %8, %7 : vector<24x128xf32>
    %10 = arith.divf %8, %9 : vector<24x128xf32>
    %c0_6 = arith.constant 0 : index
    %c0_7 = arith.constant 0 : index
    %11 = vector.load %arg4[%c0_6, %c0_7] : memref<24x1xf32, #tpu.memory_space<vmem>>, vector<24x1xf32>
    %12 = vector.broadcast %11 : vector<24x1xf32> to vector<24x128xf32>
    %13 = arith.mulf %10, %12 : vector<24x128xf32>
    %cst_8 = arith.constant dense<0.000000e+00> : vector<128xf32>
    %14 = vector.multi_reduction <add>, %13, %cst_8 [0] : vector<24x128xf32> to vector<128xf32>
    %15 = vector.shape_cast %14 : vector<128xf32> to vector<1x128xf32>
    %c0_9 = arith.constant 0 : index
    %c0_10 = arith.constant 0 : index
    %16 = memref.load %arg5[%c0_9, %c0_10] : memref<1x1xf32, #tpu.memory_space<smem>>
    %17 = vector.broadcast %16 : f32 to vector<1x128xf32>
    %18 = arith.addf %15, %17 : vector<1x128xf32>
    %cst_11 = arith.constant 0.000000e+00 : f32
    %19 = vector.broadcast %cst_11 : f32 to vector<1x128xf32>
    %20 = arith.maximumf %18, %19 : vector<1x128xf32>
    %c0_12 = arith.constant 0 : index
    %c0_13 = arith.constant 0 : index
    %21 = vector.load %arg6[%c0_12, %c0_13] : memref<1x128xf32, #tpu.memory_space<vmem>>, vector<1x128xf32>
    tpu.vector_store %arg6[%c0_12, %c0_13], %20 {strides = array<i32>} : memref<1x128xf32, #tpu.memory_space<vmem>>, vector<1x128xf32>,
    return
  }
  func.func @transform_0(%arg0: i32) -> (i32, i32) {
    %c0_i32 = arith.constant 0 : i32
    %c0_i32_0 = arith.constant 0 : i32
    return %arg0, %c0_i32 : i32, i32
  }
  func.func @transform_1(%arg0: i32) -> (i32, i32) {
    %c0_i32 = arith.constant 0 : i32
    %c0_i32_0 = arith.constant 0 : i32
    %c0_i32_1 = arith.constant 0 : i32
    return %c0_i32, %c0_i32_0 : i32, i32
  }
  func.func @transform_2(%arg0: i32) -> (i32, i32) {
    %c0_i32 = arith.constant 0 : i32
    %c0_i32_0 = arith.constant 0 : i32
    %c0_i32_1 = arith.constant 0 : i32
    return %c0_i32, %c0_i32_0 : i32, i32
  }
  func.func @transform_3(%arg0: i32) -> (i32, i32) {
    %c0_i32 = arith.constant 0 : i32
    %c0_i32_0 = arith.constant 0 : i32
    %c0_i32_1 = arith.constant 0 : i32
    return %c0_i32, %c0_i32_0 : i32, i32
  }
  func.func @transform_4(%arg0: i32) -> (i32, i32) {
    %c0_i32 = arith.constant 0 : i32
    %c0_i32_0 = arith.constant 0 : i32
    %c0_i32_1 = arith.constant 0 : i32
    return %c0_i32, %c0_i32_0 : i32, i32
  }
  func.func @transform_5(%arg0: i32) -> (i32, i32) {
    %c0_i32 = arith.constant 0 : i32
    %c0_i32_0 = arith.constant 0 : i32
    return %c0_i32, %arg0 : i32, i32
  }
}

</mosaic_0001>

<bundles_post_ra>
// kernel: tpu_custom_call.1
= control target key start
LH: loop header
LB: loop body
LE: loop exit
PB: predicated region body
PF: predicated region fallthrough
CT: control target
= control target key end

     0   :  { %s920_s0 = inlined_call_operand.vmem [shape: f32[200,32], index: 0, kind: input, shape index: {}]   ;;  %s921_s1 = inlined_call_operand.vmem [shape: f32[24,32], index: 1, kind: input, shape index: {}]   ;;  %s922_s2 = inlined_call_operand.vmem [shape: f32[24,1], index: 2, kind: input, shape index: {}]   ;;  %s923_s3 = inlined_call_operand.vmem [shape: f32[24,1], index: 3, kind: input, shape index: {}]   ;;  %s924_s4 = inlined_call_operand.<no memory space> [shape: f32[1,1], index: 4, kind: input, shape index: {}]   ;;  %s925_s5 = inlined_call_operand.hbm [shape: f32[1,256], index: 5, kind: output, shape index: {}]  }
   0x1   :  { %10 = sst [smem:[#allocation2]] %s924_s4 }
   0x2   :  { %11 = vsyncpa [#allocation4], 0 }
   0x3   :  { %13 = vsyncpa [#allocation4 + $0x1], 0  ;;  %s740_s20 = smov 0   ;;  %s742_s21 = smov 0  }
   0x4   :  { %s744_s22 = smov 0   ;;  %s746_s23 = smov 0  }
   0x5 LB: > { %s761_s4 = sadd.s32 4294967295, %s704_s23   ;;  %s525_s24 = sadd.s32 4294967294, %s704_s23   ;;  %s704_s23 = sphi %s746_s23, %s931_s23   ;;  %s700_s22 = sphi %s744_s22, %s930_s22   ;;  %s696_s21 = sphi %s742_s21, %s929_s21   ;;  %s692_s20 = sphi %s740_s20, %s928_s20  }
   0x6   : > { %s765_s25 = sadd.s32 1, %s704_s23   ;;  %s136_s26 = sadd.s32 1, %s700_s22 }
   0x7   : > { %s133_s27 = ssub.s32 %s704_s23, %s765_s25  ;;  %p146_p0 = scmp.ne.s32.totalorder %s700_s22, %s696_s21 }
   0x8   : > { %p134_p1 = scmp.eq.s32.totalorder %s133_s27, 0  ;;  %p147_p2 = scmp.eq.s32.totalorder %s761_s4, 1 }
   0x9   : > { %p152_p3 = scmp.ne.s32.totalorder %s696_s21, %s692_s20  ;;  %p153_p4 = scmp.eq.s32.totalorder %s525_s24, 1 }
   0xa   : > { %s776_s28 = scalar_select %p134_p1, %s700_s22, %s136_s26  }
   0xb   : > { %p778_p5 = por %p147_p2, %p146_p0  ;;  %p782_p6 = por %p153_p4, %p152_p3 }
   0xc   : > { %p528_p7 = scmp.ge.s32.totalorder %s704_s23, 1  ;;  %p200_p8 = scmp.lt.s32.totalorder %s704_s23, 3 }
   0xe   : > { %p201_p9 = pnand %p528_p7, %p200_p8 }
   0xf   : > { %s529_s6 = sshll.u32 (!%p201_p9), %s761_s4, 4  ;;  %s229_s13 = sand.u32 (!%p201_p9), 1, %s696_s21  }
  0x10   : > { %204 = sbr.rel (%p201_p9) target bundleno = 274 (0x112), region = 40  ;;  %p236_p10 = scmp.lt.s32.totalorder (!%p201_p9), %s529_s6, 24 }
  0x11   : > { %s466_s16 = scalar_lea.hbm (!%p201_p9), %s925_s5, %s761_s4  ;;  %s230_s17 = scalar_lea.vmem (!%p201_p9), [#allocation3], %s229_s13 }
  0x12   : > { %s468_s18 = sshll.u32 (!%p201_p9), %s230_s17, 4  ;;  %s470_s19 = sshll.u32 (!%p201_p9), %s466_s16, 4  ;;  %s469_s18 = int_to_ptr.vmem [resolvable:$true] %s468_s18  ;;  %s471_s19 = int_to_ptr.hbm [resolvable:$true] %s470_s19 }
  0x13   : > { %s458_s24 = scalar_lea.sflag (!%p201_p9), [#allocation4], %s229_s13  ;;  %s656_s26 = sshra.s32 (!%p201_p9), %s471_s19, 4  ;;  %s657_s26 = int_to_ptr.hbm [resolvable:$true] %s656_s26 }
  0x14   : > { %s658_s27 = scalar_lea.hbm (!%p201_p9), %s657_s26, 1  ;;  %p663_p0 = scmp.lt.s32.totalorder (!%p201_p9), %s657_s26, %s925_s5 }
  0x15   : > { %s933_s6 = smov (!%p236_p10, %s529_s6), 24  ;;  %vm282_vm0 = vcmask 261120   ;;  %v264_v9 = vld [vmem:[%s922_s2] sm:$0xff]  ;;  %v706_v10 = vmov 0   ;;  %v266_v11 = vld [vmem:[%s922_s2 + $0x10] sm:$0xff]  ;;  %v424_v13 = vld [vmem:[%s923_s3 + $0x8] sm:$0xff]  ;;  %p659_p11 = scmp.ne.s32.totalorder %s657_s26, %s658_s27 }
  0x16   : > { %s530_s7 = sshll.u32 %s933_s6, 3  ;;  %627 = vset.pattern.permute.xlu0 %v706_v10  ;;  %628 = vset.pattern.permute.xlu1 %v706_v10  ;;  %v265_v14 = vld [vmem:[%s922_s2 + $0x8] sm:$0xff]  ;;  %v423_v16 = vld [vmem:[%s923_s3] sm:$0xff]  ;;  %v425_v17 = vld [vmem:[%s923_s3 + $0x10] sm:$0xff] }
  0x17   : > { %s792_s10 = scalar_lea.vmem %s920_s0, %s530_s7  ;;  %269 = vperm.xlu0 %627, %v264_v9   ;;  %629 = vset.pattern.permute.xlu2 %v706_v10  ;;  %v245_v23 = vld [vmem:[%s921_s1] sm:$0xff]  ;;  %v246_v24 = vld [vmem:[%s921_s1 + $0x8] sm:$0xff]  ;;  %v247_v25 = vld [vmem:[%s921_s1 + $0x10] sm:$0xff]  ;;  %p660_p12 = pnand %p659_p11, %p778_p5 }
  0x18   : > { %v263_v0 = vld [vmem:[%s792_s10 + $0x78] sm:$0xff]  ;;  %v262_v1 = vld [vmem:[%s792_s10 + $0x70] sm:$0xff]  ;;  %v261_v2 = vld [vmem:[%s792_s10 + $0x68] sm:$0xff]  ;;  %279 = vperm.xlu1 %628, %v266_v11   ;;  %433 = vperm.xlu2 %629, %v424_v13   ;;  %s662_s7 = scalar_lea.hbm %s925_s5, 2 }
  0x19   : > { %531 = vmatpush.xpose.msk.msra.mxu0 %vm282_vm0, %v263_v0  ;;  %555 = vmatpush.xpose.msk.msra.mxu1 %vm282_vm0, %v263_v0  ;;  %v260_v3 = vld [vmem:[%s792_s10 + $0x60] sm:$0xff]  ;;  %v259_v4 = vld [vmem:[%s792_s10 + $0x58] sm:$0xff]  ;;  %v258_v5 = vld [vmem:[%s792_s10 + $0x50] sm:$0xff]  ;;  %p661_p13 = pneg %p660_p12  ;;  %p664_p1 = scmp.lt.s32.totalorder %s662_s7, %s658_s27 }
  0x1a   : > { %556 = vmatpush.xpose.msk.msra.mxu2 %vm282_vm0, %v263_v0  ;;  %v257_v6 = vld [vmem:[%s792_s10 + $0x48] sm:$0xff]  ;;  %v256_v7 = vld [vmem:[%s792_s10 + $0x40] sm:$0xff]  ;;  %v255_v8 = vld [vmem:[%s792_s10 + $0x38] sm:$0xff] }
  0x1b   : > { %v254_v12 = vld [vmem:[%s792_s10 + $0x30] sm:$0xff]  ;;  %v253_v15 = vld [vmem:[%s792_s10 + $0x28] sm:$0xff]  ;;  %v252_v18 = vld [vmem:[%s792_s10 + $0x20] sm:$0xff]  ;;  %p665_p2 = por %p664_p1, %p663_p0 }
  0x1c   : > { %v251_v19 = vld [vmem:[%s792_s10 + $0x18] sm:$0xff]  ;;  %v250_v20 = vld [vmem:[%s792_s10 + $0x10] sm:$0xff]  ;;  %v249_v21 = vld [vmem:[%s792_s10 + $0x8] sm:$0xff] }
  0x1d   : > { %532 = vmatpush.xpose.msk.msra.mxu0 %vm282_vm0, %v262_v1  ;;  %557 = vmatpush.xpose.msk.msra.mxu1 %vm282_vm0, %v262_v1  ;;  %v248_v22 = vld [vmem:[%s792_s10] sm:$0xff]  ;;  %s452_s10 = sld [smem:[#allocation2]]  ;;  %p666_p3 = pnand %p665_p2, %p661_p13 }
  0x1e   : > { %558 = vmatpush.xpose.msk.msra.mxu2 %vm282_vm0, %v262_v1 }
  0x1f   : > { %274 = vperm.xlu0 %627, %v265_v14  }
  0x20   : > { %428 = vperm.xlu1 %628, %v423_v16   ;;  %438 = vperm.xlu2 %629, %v425_v17  }
  0x21   : > { %533 = vmatpush.xpose.msk.msra.mxu0 %vm282_vm0, %v261_v2  ;;  %559 = vmatpush.xpose.msk.msra.mxu1 %vm282_vm0, %v261_v2 }
  0x22   : > { %560 = vmatpush.xpose.msk.msra.mxu2 %vm282_vm0, %v261_v2 }
  0x25   : > { %534 = vmatpush.xpose.msk.msra.mxu0 %vm282_vm0, %v260_v3  ;;  %561 = vmatpush.xpose.msk.msra.mxu1 %vm282_vm0, %v260_v3 }
  0x26   : > { %562 = vmatpush.xpose.msk.msra.mxu2 %vm282_vm0, %v260_v3 }
  0x29   : > { %535 = vmatpush.xpose.msk.msra.mxu0 %vm282_vm0, %v259_v4  ;;  %563 = vmatpush.xpose.msk.msra.mxu1 %vm282_vm0, %v259_v4 }
  0x2a   : > { %564 = vmatpush.xpose.msk.msra.mxu2 %vm282_vm0, %v259_v4 }
  0x2d   : > { %536 = vmatpush.xpose.msk.msra.mxu0 %vm282_vm0, %v258_v5  ;;  %565 = vmatpush.xpose.msk.msra.mxu1 %vm282_vm0, %v258_v5 }
  0x2e   : > { %566 = vmatpush.xpose.msk.msra.mxu2 %vm282_vm0, %v258_v5 }
  0x31   : > { %537 = vmatpush.xpose.msk.msra.mxu0 %vm282_vm0, %v257_v6  ;;  %567 = vmatpush.xpose.msk.msra.mxu1 %vm282_vm0, %v257_v6 }
  0x32   : > { %568 = vmatpush.xpose.msk.msra.mxu2 %vm282_vm0, %v257_v6 }
  0x35   : > { %538 = vmatpush.xpose.msk.msra.mxu0 %vm282_vm0, %v256_v7  ;;  %569 = vmatpush.xpose.msk.msra.mxu1 %vm282_vm0, %v256_v7 }
  0x36   : > { %570 = vmatpush.xpose.msk.msra.mxu2 %vm282_vm0, %v256_v7 }
  0x39   : > { %539 = vmatpush.xpose.msk.msra.mxu0 %vm282_vm0, %v255_v8  ;;  %571 = vmatpush.xpose.msk.msra.mxu1 %vm282_vm0, %v255_v8 }
  0x3a   : > { %572 = vmatpush.xpose.msk.msra.mxu2 %vm282_vm0, %v255_v8 }
  0x3d   : > { %540 = vmatpush.xpose.msk.msra.mxu0 %vm282_vm0, %v254_v12  ;;  %573 = vmatpush.xpose.msk.msra.mxu1 %vm282_vm0, %v254_v12 }
  0x3e   : > { %574 = vmatpush.xpose.msk.msra.mxu2 %vm282_vm0, %v254_v12 }
  0x41   : > { %541 = vmatpush.xpose.msk.msra.mxu0 %vm282_vm0, %v253_v15  ;;  %575 = vmatpush.xpose.msk.msra.mxu1 %vm282_vm0, %v253_v15 }
  0x42   : > { %576 = vmatpush.xpose.msk.msra.mxu2 %vm282_vm0, %v253_v15 }
  0x45   : > { %542 = vmatpush.xpose.msk.msra.mxu0 %vm282_vm0, %v252_v18  ;;  %577 = vmatpush.xpose.msk.msra.mxu1 %vm282_vm0, %v252_v18 }
  0x46   : > { %578 = vmatpush.xpose.msk.msra.mxu2 %vm282_vm0, %v252_v18 }
  0x49   : > { %543 = vmatpush.xpose.msk.msra.mxu0 %vm282_vm0, %v251_v19  ;;  %579 = vmatpush.xpose.msk.msra.mxu1 %vm282_vm0, %v251_v19 }
  0x4a   : > { %580 = vmatpush.xpose.msk.msra.mxu2 %vm282_vm0, %v251_v19 }
  0x4d   : > { %544 = vmatpush.xpose.msk.msra.mxu0 %vm282_vm0, %v250_v20  ;;  %581 = vmatpush.xpose.msk.msra.mxu1 %vm282_vm0, %v250_v20 }
  0x4e   : > { %582 = vmatpush.xpose.msk.msra.mxu2 %vm282_vm0, %v250_v20 }
  0x51   : > { %545 = vmatpush.xpose.msk.msra.mxu0 %vm282_vm0, %v249_v21  ;;  %583 = vmatpush.xpose.msk.msra.mxu1 %vm282_vm0, %v249_v21 }
  0x52   : > { %584 = vmatpush.xpose.msk.msra.mxu2 %vm282_vm0, %v249_v21 }
  0x55   : > { %546 = vmatpush.xpose.msk.msra.mxu0 %vm282_vm0, %v248_v22  ;;  %585 = vmatpush.xpose.msk.msra.mxu1 %vm282_vm0, %v248_v22 }
  0x56   : > { %586 = vmatpush.xpose.msk.msra.mxu2 %vm282_vm0, %v248_v22 }
  0x58   : > { %547 = vmatmul.msk.f32.vlgmr.msra.gmra.mxu0 %vm282_vm0, %v245_v23  ;;  %548 = vmatmul.msk.f32.vlgmr.msra.gmra.mxu1 %vm282_vm0, %v246_v24  ;;  %v453_v23 = vstv %s452_s10 }
  0x59   : > { %549 = vmatmul.msk.f32.vlgmr.msra.gmra.mxu2 %vm282_vm0, %v247_v25 }
  0x72   : > { %v434_v58 = vpop.permute.xlu2 %433 }
  0x7a   : > { %v439_v13 = vpop.permute.xlu2 %438 }
  0x89   : > { %v270_v26 = vpop.permute.xlu0 %269 }
  0x8a   : > { %v280_v34 = vpop.permute.xlu1 %279 }
  0x91   : > { %v275_v27 = vpop.permute.xlu0 %274 }
  0x92   : > { %v429_v7 = vpop.permute.xlu1 %428 }
  0xd5   : > { %v357_v28 = vpop.f32.mrf.mxu0  ;;  %v360_v29 = vpop.f32.mrf.mxu1 }
  0xd6   : > { %v358_v30 = vadd.f32 %v357_v28, %v270_v26  ;;  %v361_v31 = vadd.f32 %v360_v29, %v275_v27 }
  0xd8   : > { %v550_v32 = vmul.f32 -1.442695, %v358_v30  ;;  %v551_v33 = vmul.f32 -1.442695, %v361_v31 }
  0xda   : > { %630 = vpow2.f32 %v550_v32 }
  0xdb   : > { %632 = vpow2.f32 %v551_v33 }
  0xdc   : > { %v363_v35 = vpop.f32.mrf.mxu2 }
  0xdd   : > { %v364_v36 = vadd.f32 %v363_v35, %v280_v34 }
  0xdf   : > { %v552_v37 = vmul.f32 -1.442695, %v364_v36 }
  0xe0   : > { %v631_v38 = vpop.eup %630 }
  0xe1   : > { %v633_v39 = vpop.eup %632  ;;  %v375_v40 = vadd.f32 1.0, %v631_v38  ;;  %634 = vpow2.f32 %v552_v37 }
  0xe2   : > { %v376_v41 = vadd.f32 1.0, %v633_v39 }
  0xe3   : > { %636 = vrcp.f32 %v375_v40  ;;  %v389_v51 = vand.u32 2147483648, %v375_v40  ;;  %v387_v53 = vand.u32 2147483647, %v375_v40  ;;  %vm383_vm3 = vweird.f32 %v375_v40 }
  0xe4   : > { %638 = vrcp.f32 %v376_v41  ;;  %v404_v52 = vand.u32 2147483648, %v376_v41  ;;  %v402_v55 = vand.u32 2147483647, %v376_v41  ;;  %vm398_vm5 = vweird.f32 %v376_v41 }
  0xe5   : > { %v390_v62 = vor.u32 1.1754944e-38, %v389_v51  ;;  %vm388_vm7 = vcmp.eq.f32.partialorder %v387_v53, 8.507059e+37 }
  0xe6   : > { %v405_v63 = vor.u32 1.1754944e-38, %v404_v52  ;;  %vm403_vm8 = vcmp.eq.f32.partialorder %v402_v55, 8.507059e+37 }
  0xe7   : > { %v635_v42 = vpop.eup %634 }
  0xe8   : > { %v377_v43 = vadd.f32 1.0, %v635_v42 }
  0xe9   : > { %v637_v44 = vpop.eup %636 }
  0xea   : > { %v639_v45 = vpop.eup %638  ;;  %v379_v46 = vmul.f32 %v637_v44, %v375_v40  ;;  %640 = vrcp.f32 %v377_v43  ;;  %vm384_vm1 = vweird.f32 %v637_v44  ;;  %v419_v4 = vand.u32 2147483648, %v377_v43 }
  0xeb   : > { %v394_v47 = vmul.f32 %v639_v45, %v376_v41  ;;  %vm399_vm2 = vweird.f32 %v639_v45  ;;  %vm385_vm4 = vmor %vm383_vm3, %vm384_vm1  ;;  %v417_v6 = vand.u32 2147483647, %v377_v43  ;;  %vm413_vm10 = vweird.f32 %v377_v43 }
  0xec   : > { %v380_v48 = vsub.f32 1.0, %v379_v46  ;;  %vm400_vm6 = vmor %vm398_vm5, %vm399_vm2  ;;  %v420_v11 = vor.u32 1.1754944e-38, %v419_v4 }
  0xed   : > { %v395_v49 = vsub.f32 1.0, %v394_v47  ;;  %vm418_vm12 = vcmp.eq.f32.partialorder %v417_v6, 8.507059e+37 }
  0xee   : > { %v381_v50 = vmul.f32 %v637_v44, %v380_v48 }
  0xef   : > { %v396_v54 = vmul.f32 %v639_v45, %v395_v49 }
  0xf0   : > { %v641_v56 = vpop.eup %640  ;;  %v382_v57 = vadd.f32 %v637_v44, %v381_v50 }
  0xf1   : > { %v397_v59 = vadd.f32 %v639_v45, %v396_v54  ;;  %v409_v60 = vmul.f32 %v641_v56, %v377_v43  ;;  %vm414_vm9 = vweird.f32 %v641_v56 }
  0xf2   : > { %v386_v61 = vsel %vm385_vm4, %v637_v44, %v382_v57  ;;  %vm415_vm11 = vmor %vm413_vm10, %vm414_vm9 }
  0xf3   : > { %v401_v0 = vsel %vm400_vm6, %v639_v45, %v397_v59  ;;  %v410_v1 = vsub.f32 1.0, %v409_v60  ;;  %v391_v2 = vsel %vm388_vm7, %v390_v62, %v386_v61 }
  0xf4   : > { %v406_v3 = vsel %vm403_vm8, %v405_v63, %v401_v0  ;;  %v441_v8 = vmul.f32 %v429_v7, %v391_v2 }
  0xf5   : > { %v411_v5 = vmul.f32 %v641_v56, %v410_v1  ;;  %v442_v9 = vmul.f32 %v434_v58, %v406_v3 }
  0xf7   : > { %v412_v10 = vadd.f32 %v641_v56, %v411_v5  ;;  %v444_v15 = vadd.f32 %v442_v9, %v441_v8 }
  0xf9   : > { %v416_v12 = vsel %vm415_vm11, %v641_v56, %v412_v10 }
  0xfa   : > { %v421_v14 = vsel %vm418_vm12, %v420_v11, %v416_v12 }
  0xfb   : > { %v443_v16 = vmul.f32 %v439_v13, %v421_v14 }
  0xfd   : > { %v445_v17 = vadd.f32 %v444_v15, %v443_v16 }
  0xff   : > { %v446_v18 = vrot.slane %v445_v17, 4 }
 0x101   : > { %v447_v19 = vadd.f32 %v446_v18, %v445_v17 }
 0x103   : > { %v448_v20 = vrot.slane %v447_v19, 2 }
 0x105   : > { %v449_v21 = vadd.f32 %v448_v20, %v447_v19 }
 0x107   : > { %v450_v22 = vrot.slane %v449_v21, 1 }
 0x109   : > { %v451_v24 = vadd.f32 %v450_v22, %v449_v21 }
 0x10b   : > { %v454_v25 = vadd.f32 %v453_v23, %v451_v24 }
 0x10d   : > { %v455_v26 = vmax.f32 %v454_v25, 0.0 }
 0x10f   : > { %456 = vst [vmem:[%s230_s17] sm:$0x1] %v455_v26 }
 0x110   : > { %669 = shalt.err (!%p666_p3)
}
 0x111   : > { %587 = dma.vmem_to_hbm [thread:$0]  (%p778_p5), %s469_s18, 16, %s471_s19, %s458_s24  }
 0x112 PF: > { %p593_p4 = scmp.ge.s32.totalorder %s704_s23, 2  ;;  %s482_s11 = sand.u32 1, %s692_s20  }
 0x113   : > { %s483_s12 = scalar_lea.sflag [#allocation4], %s482_s11 }
 0x114   : > { %p590_p7 = pnand %p593_p4, %p782_p6 }
 0x116   : > { %p591_p8 = pneg %p590_p7 }
 0x118   : > { %687 = dma.done.wait (%p591_p8), %s483_s12, 16  }
 0x119   : > { %689 = vsyncadd (%p591_p8), %s483_s12, 4294967280  ;;  %p16_p9 = scmp.ge.s32.totalorder %s765_s25, 4   ;;  %s928_s20 = smov %s696_s21 }
 0x11a   : > { %s929_s21 = smov %s700_s22  ;;  %s930_s22 = smov %s776_s28 }
 0x11b   : > { %s931_s23 = smov %s765_s25  ;;  %18 = sbr.rel (!%p16_p9) target bundleno = 5 (0x5), region = 75 }
 0x120   :  { %488 = vsyncpa [#allocation4], 1 }
 0x121   :  { %490 = vsyncpa [#allocation4 + $0x1], 1 }

</bundles_post_ra>
